<compile_context>
chip_gen: v5e
topology: v5e:2x2
jax: 0.10.0
libtpu: 0.0.40
codegen_flags: <defaults>
</compile_context>

<pallas_src>
import functools
import math

import jax
import jax.numpy as jnp
from jax import lax
from jax.experimental import pallas as pl
from jax.experimental.pallas import tpu as pltpu


def int2tuple(variable, length):
    if isinstance(variable, int):
        return (variable,) * length
    assert len(variable) == length, f"The length of {variable} is not {length}!"
    return tuple(variable)


def _ceil_div(a, b):
    return -(-a // b)


def _round_up(a, b):
    return _ceil_div(a, b) * b


def _make_conv_kernel(KH, KW, sw, dh, dw, cin, Wpp, M, n_views):
    """Kernel for one (batch, row-tile) grid step."""
    K = KH * KW * cin

    def kernel(*refs):
        x_refs = refs[:n_views]            # n_views x (Cin, RS) flat slab views
        w_ref = refs[n_views]              # (Cout, K)
        b_ref = refs[n_views + 1]          # (Cout, 1)
        o_ref = refs[n_views + 2]          # (Cout, M) lane-dense output tile

        # Flat slab covering this row tile plus its halo.  Every piece is a
        # multiple of 128 lanes, so the concatenation is layout-free.
        if n_views > 1:
            slab = jnp.concatenate([r[...] for r in x_refs], axis=-1)
        else:
            slab = x_refs[0][...]

        # im2col: each tap is a static (strided) slice of the flat slab.
        taps = []
        for kh in range(KH):               # KH*KW is small -> full static unroll
            for kw in range(KW):
                base = kh * dh * Wpp + kw * dw
                taps.append(lax.slice(
                    slab,
                    (0, base),
                    (cin, base + (M - 1) * sw + 1),
                    (1, sw)))              # (Cin, M)
        col = jnp.stack(taps, axis=0).reshape(K, M)   # (K, M), k = tap*Cin + ci

        # Single MXU contraction (K = KH*KW*Cin) + bias, f32 accumulation.
        acc = jnp.dot(w_ref[...], col, preferred_element_type=jnp.float32)
        acc = acc + b_ref[...].astype(jnp.float32)
        o_ref[...] = acc.astype(o_ref.dtype)

    return kernel


def noncausal_conv2d(x_nchw, weight_oihw, bias, *, kernel_size, stride=1,
                     padding=-1, dilation=1):
    """Pallas implementation of NonCausalConv2d.forward (groups=1, bias=True)."""
    KH, KW = int2tuple(kernel_size, 2)
    sh, sw = int2tuple(stride, 2)
    dh, dw = int2tuple(dilation, 2)
    if isinstance(padding, int) and padding < 0:
        padding = ((KH - 1) // 2 * dh, (KW - 1) // 2 * dw)
    ph, pw = int2tuple(padding, 2)

    B, Cin, H, W = x_nchw.shape
    Cout, Cin_w, _, _ = weight_oihw.shape
    assert Cin_w == Cin, "groups != 1 is not supported"

    OH = (H + 2 * ph - dh * (KH - 1) - 1) // sh + 1
    OW = (W + 2 * pw - dw * (KW - 1) - 1) // sw + 1

    # ---- flat-im2col geometry --------------------------------------------
    # Output (oh, ow), tap (kh, kw) reads padded-flat index
    #     (oh*sh + kh*dh) * Wpp + ow*sw + kw*dw.
    # Choosing OWF with OWF*sw == sh*Wpp makes every tap of a TR-row output tile
    # one contiguous (stride sw) slice of the flat image covering M = TR*OWF
    # "virtual" output columns; columns >= OW are harmless garbage sliced off later.
    g = sh // math.gcd(sh, sw)                           # OWF granularity (Wpp integral)
    owf_min = max(OW, _ceil_div((W + 2 * pw) * sh, sw))  # also ensures Wpp >= W + 2*pw

    # Row tile TR: prefer >= 4 row tiles so the grid has pipeline depth.
    TR = OH
    for min_tiles in (4, 2):
        cand = [t for t in (4, 8, 2, 16, 32, 64)
                if OH % t == 0 and OH // t >= min_tiles]
        if cand:
            TR = cand[0]
            break

    # Lane-dense tiles: make M = TR*OWF a multiple of 128 (unmasked stores).
    need = 128 // math.gcd(128, TR)
    step = need * g // math.gcd(need, g)
    OWF = _round_up(owf_min, step)
    Wpp = OWF * sw // sh
    M = TR * OWF                                    # output columns per grid step
    RS = M * sw                                     # == TR*sh*Wpp, flat stride per row tile
    n_tiles = OH // TR

    # Slab needed per tile (incl. halo) and how many RS-sized views cover it.
    base_max = (KH - 1) * dh * Wpp + (KW - 1) * dw
    slab_len = base_max + (M - 1) * sw + 1
    n_views = _ceil_div(slab_len, RS)

    # Flat padded image length and the corresponding padded height.
    Lp = (n_tiles - 1 + n_views) * RS
    Hpp = Lp // Wpp                                 # RS is a multiple of Wpp

    # ---- glue: ONE pad in native NCHW layout, then a free reshape ----------
    x_pad = jnp.pad(
        x_nchw,
        ((0, 0), (0, 0), (ph, Hpp - H - ph), (pw, Wpp - W - pw)))
    x_flat = x_pad.reshape(B, Cin, Lp)

    K = KH * KW * Cin
    # w2[co, (kh*KW + kw)*Cin + ci] = weight[co, ci, kh, kw]   (matches im2col order)
    w2 = jnp.transpose(weight_oihw, (0, 2, 3, 1)).reshape(Cout, K)
    b2 = bias.reshape(Cout, 1)

    kernel = _make_conv_kernel(KH, KW, sw, dh, dw, Cin, Wpp, M, n_views)

    # Overlapping row-tile slabs are expressed as n_views shifted block views of
    # the same flat array (each view block is 128-lane aligned and non-overlapping).
    x_specs = [
        pl.BlockSpec((None, Cin, RS), (lambda b, r, v=v: (b, 0, r + v)))
        for v in range(n_views)
    ]

    out_flat = pl.pallas_call(
        kernel,
        out_shape=jax.ShapeDtypeStruct((B, Cout, n_tiles * M), x_nchw.dtype),
        grid=(B, n_tiles),
        in_specs=x_specs + [
            pl.BlockSpec((Cout, K), lambda b, r: (0, 0)),
            pl.BlockSpec((Cout, 1), lambda b, r: (0, 0)),
        ],
        out_specs=pl.BlockSpec((None, Cout, M), lambda b, r: (b, 0, r)),
        compiler_params=pltpu.CompilerParams(
            dimension_semantics=("parallel", "parallel")),
    )(*([x_flat] * n_views), w2, b2)

    # Free reshape + drop the garbage columns; result is already NCHW.
    return out_flat.reshape(B, Cout, OH, OWF)[:, :, :, :OW]


def _reference_conv(x_nchw, weight_oihw, bias, *, kernel_size, stride=1,
                    padding=-1, dilation=1):
    KH, KW = int2tuple(kernel_size, 2)
    sh, sw = int2tuple(stride, 2)
    dh, dw = int2tuple(dilation, 2)
    if isinstance(padding, int) and padding < 0:
        padding = ((KH - 1) // 2 * dh, (KW - 1) // 2 * dw)
    ph, pw = int2tuple(padding, 2)
    out = lax.conv_general_dilated(
        x_nchw, weight_oihw,
        window_strides=(sh, sw),
        padding=((ph, ph), (pw, pw)),
        rhs_dilation=(dh, dw),
        dimension_numbers=("NCHW", "OIHW", "NCHW"),
    )
    return out + bias.reshape(1, -1, 1, 1)


if __name__ == "__main__":
    # Module config (deterministic, in-script).
    in_channels, out_channels = 4, 8
    kernel_size, stride, padding, dilation = 3, 1, -1, 1

    key = jax.random.PRNGKey(0)
    kx, kw, kb = jax.random.split(key, 3)

    # Input (B, C, H, W) as the Conv2d inside the module expects.
    x = jax.random.normal(kx, (2, 4, 16, 16), dtype=jnp.float32)

    # Deterministic parameter init (PyTorch Conv2d weight shape: (O, I, KH, KW)).
    fan_in = in_channels * kernel_size * kernel_size
    bound = 1.0 / (fan_in ** 0.5)
    weight = jax.random.uniform(
        kw, (out_channels, in_channels, kernel_size, kernel_size),
        minval=-bound, maxval=bound, dtype=jnp.float32)
    bias = jax.random.uniform(
        kb, (out_channels,), minval=-bound, maxval=bound, dtype=jnp.float32)

    conv_fn = jax.jit(functools.partial(
        noncausal_conv2d, kernel_size=kernel_size, stride=stride,
        padding=padding, dilation=dilation))

    out = jax.block_until_ready(conv_fn(x, weight, bias))

    ref = _reference_conv(
        x, weight, bias, kernel_size=kernel_size, stride=stride,
        padding=padding, dilation=dilation)

    assert out.shape == ref.shape, (out.shape, ref.shape)
    assert jnp.allclose(out, ref, atol=1e-4, rtol=1e-4), float(
        jnp.max(jnp.abs(out - ref)))

    print("KERNEL_OK")
</pallas_src>

<mosaic_0001>
module attributes {stable_mosaic.version = 11 : i64} {
  func.func @kernel(%arg0: i32, %arg1: i32, %arg2: memref<1x4x128xf32, #tpu.memory_space<vmem>>, %arg3: memref<1x4x128xf32, #tpu.memory_space<vmem>>, %arg4: memref<8x36xf32, #tpu.memory_space<vmem>>, %arg5: memref<8x1xf32, #tpu.memory_space<vmem>>, %arg6: memref<1x8x128xf32, #tpu.memory_space<vmem>>) attributes {dimension_semantics = [#tpu.dimension_semantics<parallel>, #tpu.dimension_semantics<parallel>], iteration_bounds = array<i64: 2, 4>, scalar_prefetch = 0 : i64, scratch_operands = 0 : i64, tpu.core_type = #tpu.core_type<tc>, window_params = [{transform_indices = @transform_0, window_bounds = array<i64: 1, 4, 128>}, {transform_indices = @transform_1, window_bounds = array<i64: 1, 4, 128>}, {pipeline_mode = #tpu.pipeline_mode<synchronous>, transform_indices = @transform_2, window_bounds = array<i64: 8, 36>}, {pipeline_mode = #tpu.pipeline_mode<synchronous>, transform_indices = @transform_3, window_bounds = array<i64: 8, 1>}, {transform_indices = @transform_4, window_bounds = array<i64: 1, 8, 128>}]} {
    %c0 = arith.constant 0 : index
    %c0_0 = arith.constant 0 : index
    %c0_1 = arith.constant 0 : index
    %0 = vector.load %arg2[%c0, %c0_0, %c0_1] : memref<1x4x128xf32, #tpu.memory_space<vmem>>, vector<1x4x128xf32>
    %1 = vector.shape_cast %0 : vector<1x4x128xf32> to vector<4x128xf32>
    %c0_2 = arith.constant 0 : index
    %c0_3 = arith.constant 0 : index
    %c0_4 = arith.constant 0 : index
    %2 = vector.load %arg3[%c0_2, %c0_3, %c0_4] : memref<1x4x128xf32, #tpu.memory_space<vmem>>, vector<1x4x128xf32>
    %3 = vector.shape_cast %2 : vector<1x4x128xf32> to vector<4x128xf32>
    %4 = tpu.concatenate %1, %3 in 1 : vector<4x128xf32>, vector<4x128xf32> -> vector<4x256xf32>
    %5 = vector.extract_strided_slice %4 {offsets = [0, 0], sizes = [4, 128], strides = [1, 1]} : vector<4x256xf32> to vector<4x128xf32>
    %6 = vector.extract_strided_slice %4 {offsets = [0, 1], sizes = [4, 128], strides = [1, 1]} : vector<4x256xf32> to vector<4x128xf32>
    %7 = vector.extract_strided_slice %4 {offsets = [0, 2], sizes = [4, 128], strides = [1, 1]} : vector<4x256xf32> to vector<4x128xf32>
    %8 = vector.extract_strided_slice %4 {offsets = [0, 32], sizes = [4, 128], strides = [1, 1]} : vector<4x256xf32> to vector<4x128xf32>
    %9 = vector.extract_strided_slice %4 {offsets = [0, 33], sizes = [4, 128], strides = [1, 1]} : vector<4x256xf32> to vector<4x128xf32>
    %10 = vector.extract_strided_slice %4 {offsets = [0, 34], sizes = [4, 128], strides = [1, 1]} : vector<4x256xf32> to vector<4x128xf32>
    %11 = vector.extract_strided_slice %4 {offsets = [0, 64], sizes = [4, 128], strides = [1, 1]} : vector<4x256xf32> to vector<4x128xf32>
    %12 = vector.extract_strided_slice %4 {offsets = [0, 65], sizes = [4, 128], strides = [1, 1]} : vector<4x256xf32> to vector<4x128xf32>
    %13 = vector.extract_strided_slice %4 {offsets = [0, 66], sizes = [4, 128], strides = [1, 1]} : vector<4x256xf32> to vector<4x128xf32>
    %14 = vector.shape_cast %5 : vector<4x128xf32> to vector<1x4x128xf32>
    %15 = vector.shape_cast %6 : vector<4x128xf32> to vector<1x4x128xf32>
    %16 = vector.shape_cast %7 : vector<4x128xf32> to vector<1x4x128xf32>
    %17 = vector.shape_cast %8 : vector<4x128xf32> to vector<1x4x128xf32>
    %18 = vector.shape_cast %9 : vector<4x128xf32> to vector<1x4x128xf32>
    %19 = vector.shape_cast %10 : vector<4x128xf32> to vector<1x4x128xf32>
    %20 = vector.shape_cast %11 : vector<4x128xf32> to vector<1x4x128xf32>
    %21 = vector.shape_cast %12 : vector<4x128xf32> to vector<1x4x128xf32>
    %22 = vector.shape_cast %13 : vector<4x128xf32> to vector<1x4x128xf32>
    %23 = tpu.concatenate %14, %15, %16, %17, %18, %19, %20, %21, %22 in 0 : vector<1x4x128xf32>, vector<1x4x128xf32>, vector<1x4x128xf32>, vector<1x4x128xf32>, vector<1x4x128xf32>, vector<1x4x128xf32>, vector<1x4x128xf32>, vector<1x4x128xf32>, vector<1x4x128xf32> -> vector<9x4x128xf32>
    %24 = vector.shape_cast %23 : vector<9x4x128xf32> to vector<36x128xf32>
    %c0_5 = arith.constant 0 : index
    %c0_6 = arith.constant 0 : index
    %25 = vector.load %arg4[%c0_5, %c0_6] : memref<8x36xf32, #tpu.memory_space<vmem>>, vector<8x36xf32>
    %cst = arith.constant dense<0.000000e+00> : vector<8x128xf32>
    %26 = tpu.matmul %25, %24, %cst {dimension_numbers = #tpu.dot_dimension_numbers<[1], [0], [0], [1], [0, 0, 1, 1], [], []>} : vector<8x36xf32>, vector<36x128xf32>, vector<8x128xf32> -> vector<8x128xf32>
    %c0_7 = arith.constant 0 : index
    %c0_8 = arith.constant 0 : index
    %27 = vector.load %arg5[%c0_7, %c0_8] : memref<8x1xf32, #tpu.memory_space<vmem>>, vector<8x1xf32>
    %28 = vector.broadcast %27 : vector<8x1xf32> to vector<8x128xf32>
    %29 = arith.addf %26, %28 : vector<8x128xf32>
    %c0_9 = arith.constant 0 : index
    %c0_10 = arith.constant 0 : index
    %c0_11 = arith.constant 0 : index
    %30 = vector.load %arg6[%c0_9, %c0_10, %c0_11] : memref<1x8x128xf32, #tpu.memory_space<vmem>>, vector<1x8x128xf32>
    %31 = vector.shape_cast %30 : vector<1x8x128xf32> to vector<8x128xf32>
    %32 = vector.shape_cast %29 : vector<8x128xf32> to vector<1x8x128xf32>
    tpu.vector_store %arg6[%c0_9, %c0_10, %c0_11], %32 {strides = array<i32>} : memref<1x8x128xf32, #tpu.memory_space<vmem>>, vector<1x8x128xf32>,
    return
  }
  func.func @transform_0(%arg0: i32, %arg1: i32) -> (i32, i32, i32) {
    %c0_i32 = arith.constant 0 : i32
    %0 = arith.addi %arg1, %c0_i32 : i32
    %c0_i32_0 = arith.constant 0 : i32
    %c0_i32_1 = arith.constant 0 : i32
    return %arg0, %c0_i32_0, %0 : i32, i32, i32
  }
  func.func @transform_1(%arg0: i32, %arg1: i32) -> (i32, i32, i32) {
    %c1_i32 = arith.constant 1 : i32
    %0 = arith.addi %arg1, %c1_i32 : i32
    %c0_i32 = arith.constant 0 : i32
    %c0_i32_0 = arith.constant 0 : i32
    return %arg0, %c0_i32, %0 : i32, i32, i32
  }
  func.func @transform_2(%arg0: i32, %arg1: i32) -> (i32, i32) {
    %c0_i32 = arith.constant 0 : i32
    %c0_i32_0 = arith.constant 0 : i32
    %c0_i32_1 = arith.constant 0 : i32
    return %c0_i32, %c0_i32_0 : i32, i32
  }
  func.func @transform_3(%arg0: i32, %arg1: i32) -> (i32, i32) {
    %c0_i32 = arith.constant 0 : i32
    %c0_i32_0 = arith.constant 0 : i32
    %c0_i32_1 = arith.constant 0 : i32
    return %c0_i32, %c0_i32_0 : i32, i32
  }
  func.func @transform_4(%arg0: i32, %arg1: i32) -> (i32, i32, i32) {
    %c0_i32 = arith.constant 0 : i32
    %c0_i32_0 = arith.constant 0 : i32
    return %arg0, %c0_i32, %arg1 : i32, i32, i32
  }
}

</mosaic_0001>

<bundles_post_ra>
// kernel: noncausal_conv2d.1
= control target key start
LH: loop header
LB: loop body
LE: loop exit
PB: predicated region body
PF: predicated region fallthrough
CT: control target
= control target key end

     0   :  { %s622_s15 = smov 0   ;;  %s624_s16 = smov 0   ;;  %s693_s0 = inlined_call_operand.vmem [shape: f32[2,4,640], index: 0, kind: input, shape index: {}, may-alias: {0,1}]   ;;  %s694_s1 = inlined_call_operand.vmem [shape: f32[2,4,640], index: 1, kind: input, shape index: {}, may-alias: {0,1}]   ;;  %s695_s2 = inlined_call_operand.vmem [shape: f32[8,36], index: 2, kind: input, shape index: {}]   ;;  %s696_s3 = inlined_call_operand.vmem [shape: f32[8,1], index: 3, kind: input, shape index: {}]   ;;  %s697_s4 = inlined_call_operand.vmem [shape: f32[2,8,512], index: 4, kind: output, shape index: {}]  }
   0x1   :  { %s626_s17 = smov 0   ;;  %s628_s18 = smov 0  }
   0x2   :  { %s630_s19 = smov 0  }
   0x3 LB: > { %s23_s20 = sadd.s32 1, %s578_s17  ;;  %s26_s21 = sadd.s32 1, %s582_s18  ;;  %s586_s19 = sphi %s630_s19, %s14_s19   ;;  %s582_s18 = sphi %s628_s18, %s701_s18   ;;  %s578_s17 = sphi %s626_s17, %s700_s17   ;;  %s574_s16 = sphi %s624_s16, %s699_s16   ;;  %s570_s15 = sphi %s622_s15, %s698_s15  }
   0x4   : > { %p24_p0 = scmp.ge.s32.totalorder %s23_s20, 4  ;;  %p487_p1 = scmp.ge.s32.totalorder %s586_s19, 1 }
   0x5   : > { %p200_p2 = scmp.lt.s32.totalorder %s586_s19, 9 }
   0x6   : > { %s703_s20 = smov (%p24_p0, %s23_s20), 0  ;;  %s705_s21 = smov (!%p24_p0, %s26_s21), %s582_s18 }
   0x7   : > { %p201_p3 = pnand %p487_p1, %p200_p2  ;;  %p28_p4 = scmp.ge.s32.totalorder %s705_s21, 2 }
   0x8   : > { %p241_p5 = scmp.lt.s32.totalorder (!%p201_p3), %s574_s16, 1  ;;  %p243_p6 = scmp.lt.s32.totalorder (!%p201_p3), %s570_s15, 4 }
   0x9   : > { %s707_s21 = smov (%p28_p4, %s705_s21), 0  ;;  %204 = sbr.rel (%p201_p3) target bundleno = 318 (0x13e), region = 36 }
   0xa   : > { %s249_s24 = sadd.s32 (!%p201_p3), 1, %s570_s15  ;;  %s588_s30 = smov (!%p201_p3), 62  }
   0xb   : > { %p252_p7 = scmp.lt.s32.totalorder (!%p201_p3), %s249_s24, 4  ;;  %s589_s5 = smov (!%p201_p3), 127  }
   0xc   : > { %s590_s7 = smov (!%p201_p3), 64   ;;  %s591_s12 = smov (!%p201_p3), 63  }
   0xd   : > { %s592_s13 = smov (!%p201_p3), 95   ;;  %s593_s14 = smov (!%p201_p3), 94  }
   0xe   : > { %s709_s16 = smov (!%p241_p5, %s574_s16), 1  ;;  %s711_s24 = smov (!%p252_p7, %s249_s24), 4  ;;  %vm305_vm0 = vcmask 523264   ;;  %vm275_vm1 = vcmask 1039360   ;;  %vm317_vm2 = vcmask 506880   ;;  %vm311_vm3 = vcmask 515072  }
   0xf   : > { %s244_s22 = scalar_select %p243_p6, %s570_s15, 4  ;;  %v320_v16 = vld [vmem:[%s696_s3] sm:$0xff]  ;;  %vm299_vm4 = vcmask 769024   ;;  %vm293_vm5 = vcmask 777216   ;;  %v596_v18 = vmov 0   ;;  %vm355_vm6 = vcmask 1043456  }
  0x10   : > { %s496_s23 = smul.u32 5, %s709_s16  ;;  %546 = vset.pattern.permute.xlu1 %v596_v18  ;;  %547 = vset.pattern.permute.xlu0 %v596_v18  ;;  %vm281_vm7 = vcmask 1031168   ;;  %vm287_vm8 = vcmask 785408   ;;  %v319_v33 = vld [vmem:[%s695_s2] sm:$0xff]  ;;  %vm351_vm9 = vcmask 293888   ;;  %p261_p8 = scmp.lt.s32.totalorder %s570_s15, 3 }
  0x11   : > { %s490_s28 = sshll.u32 %s709_s16, 2 }
  0x12   : > { %s246_s25 = sadd.s32 %s496_s23, %s244_s22  ;;  %s255_s6 = sadd.s32 %s496_s23, %s711_s24 }
  0x13   : > { %s488_s26 = sshll.u32 %s246_s25, 2  ;;  %s489_s8 = sshll.u32 %s255_s6, 2 }
  0x14   : > { %s248_s29 = scalar_lea.vmem %s693_s0, %s488_s26  ;;  %s257_s11 = scalar_lea.vmem %s694_s1, %s489_s8 }
  0x15   : > { %v267_v0 = vld [vmem:[%s248_s29] sm:$0xf]  ;;  %s594_s22 = smov 126   ;;  %s595_s23 = smov 96  }
  0x16   : > { %313 = vrot.lane.b32.xlu1 %v267_v0, %s588_s30  ;;  %326 = vst [vmem:[#allocation1] ss:$2 sm:$0xff] %v267_v0  ;;  %271 = vrot.lane.b32.xlu0 %v267_v0, %s589_s5  ;;  %v268_v1 = vld [vmem:[%s257_s11] sm:$0xf]  ;;  %s713_s15 = smov (!%p261_p8, %s570_s15), 3 }
  0x17   : > { %301 = vrot.lane.b32.xlu2 %v267_v0, %s590_s7  ;;  %s264_s29 = sadd.s32 %s490_s28, %s713_s15 }
  0x1e   : > { %315 = vrot.lane.b32.xlu1 %v268_v1, %s588_s30  ;;  %273 = vrot.lane.b32.xlu0 %v268_v1, %s589_s5  ;;  %s491_s30 = sshll.u32 %s264_s29, 3 }
  0x1f   : > { %303 = vrot.lane.b32.xlu2 %v268_v1, %s590_s7  ;;  %s266_s7 = scalar_lea.vmem %s697_s4, %s491_s30 }
  0x26   : > { %309 = vrot.lane.b32.xlu1 %v268_v1, %s591_s12  ;;  %307 = vrot.lane.b32.xlu0 %v267_v0, %s591_s12 }
  0x27   : > { %289 = vrot.lane.b32.xlu2 %v267_v0, %s592_s13 }
  0x2e   : > { %295 = vrot.lane.b32.xlu1 %v267_v0, %s593_s14  ;;  %291 = vrot.lane.b32.xlu0 %v268_v1, %s592_s13 }
  0x2f   : > { %297 = vrot.lane.b32.xlu2 %v268_v1, %s593_s14 }
  0x36   : > { %279 = vrot.lane.b32.xlu1 %v268_v1, %s594_s22  ;;  %277 = vrot.lane.b32.xlu0 %v267_v0, %s594_s22 }
  0x37   : > { %283 = vrot.lane.b32.xlu2 %v267_v0, %s595_s23 }
  0x3e   : > { %285 = vrot.lane.b32.xlu0 %v268_v1, %s595_s23  ;;  %323 = vperm.xlu1 %546, %v320_v16  }
  0x71   : > { %v302_v2 = vpop.permute.xlu2 %301 }
  0x79   : > { %v304_v3 = vpop.permute.xlu2 %303 }
  0x7a   : > { %v306_v4 = vsel %vm305_vm0, %v302_v2, %v304_v3 }
  0x7b   : > { %338 = vst [vmem:[#allocation1 + $0x30] ss:$2 sm:$0xff] %v306_v4 }
  0x81   : > { %v290_v10 = vpop.permute.xlu2 %289 }
  0x88   : > { %v314_v5 = vpop.permute.xlu1 %313  ;;  %v272_v6 = vpop.permute.xlu0 %271 }
  0x89   : > { %v298_v17 = vpop.permute.xlu2 %297 }
  0x90   : > { %v316_v7 = vpop.permute.xlu1 %315  ;;  %v274_v8 = vpop.permute.xlu0 %273 }
  0x91   : > { %v276_v9 = vsel %vm275_vm1, %v272_v6, %v274_v8  ;;  %v318_v13 = vsel %vm317_vm2, %v314_v5, %v316_v7  ;;  %v284_v29 = vpop.permute.xlu2 %283 }
  0x92   : > { %328 = vst [vmem:[#allocation1 + $0x1] ss:$2 sm:$0xff] %v276_v9 }
  0x98   : > { %v310_v11 = vpop.permute.xlu1 %309  ;;  %v308_v12 = vpop.permute.xlu0 %307 }
  0x99   : > { %v341_v14 = vld.sshfl [vmem:[#allocation1] sm:$0xff pattern:$0x75316420]  ;;  %v312_v15 = vsel %vm311_vm3, %v308_v12, %v310_v11 }
  0x9a   : > { %345 = vst [vmem:[#allocation1] ss:$2 sm:$0xff] %v318_v13 }
  0x9b   : > { %340 = vst [vmem:[#allocation1 + $0x31] ss:$2 sm:$0xff] %v312_v15 }
  0xa0   : > { %v296_v19 = vpop.permute.xlu1 %295  ;;  %v292_v20 = vpop.permute.xlu0 %291 }
  0xa1   : > { %v300_v21 = vsel %vm299_vm4, %v296_v19, %v298_v17  ;;  %v294_v22 = vsel %vm293_vm5, %v290_v10, %v292_v20  ;;  %v346_v23 = vld.sshfl [vmem:[#allocation1] sm:$0xff pattern:$0x75316420] }
  0xa2   : > { %336 = vst [vmem:[#allocation1 + $0x21] ss:$2 sm:$0xff] %v300_v21  ;;  %492 = vmatpush.msk.msra.mxu0 %vm355_vm6, %v346_v23  ;;  %v344_v24 = vld.sshfl [vmem:[#allocation1 + $0x30] sm:$0xff pattern:$0x75316420] }
  0xa3   : > { %334 = vst [vmem:[#allocation1 + $0x20] ss:$2 sm:$0xff] %v294_v22 }
  0xa4   : > { %370 = vmatpush.msra.mxu0 %v344_v24 }
  0xa8   : > { %v280_v25 = vpop.permute.xlu1 %279  ;;  %v278_v26 = vpop.permute.xlu0 %277 }
  0xa9   : > { %v282_v27 = vsel %vm281_vm7, %v278_v26, %v280_v25 }
  0xaa   : > { %330 = vst [vmem:[#allocation1 + $0x10] ss:$2 sm:$0xff] %v282_v27  ;;  %v343_v28 = vld.sshfl [vmem:[#allocation1 + $0x20] sm:$0xff pattern:$0x75316420] }
  0xab   : > { %371 = vmatpush.msra.mxu0 %v343_v28 }
  0xb0   : > { %v286_v30 = vpop.permute.xlu0 %285  ;;  %v324_v34 = vpop.permute.xlu1 %323 }
  0xb1   : > { %v288_v31 = vsel %vm287_vm8, %v284_v29, %v286_v30 }
  0xb2   : > { %332 = vst [vmem:[#allocation1 + $0x11] ss:$2 sm:$0xff] %v288_v31 }
  0xb9   : > { %v342_v32 = vld.sshfl [vmem:[#allocation1 + $0x10] sm:$0xff pattern:$0x75316420] }
  0xba   : > { %372 = vmatpush.msra.mxu0 %v342_v32 }
  0xbc   : > { %373 = vmatpush.msra.mxu0 %v341_v14 }
  0xbd   : > { %493 = vmatmul.msk.f32.vlgmr.msra.gmra.mxu0 %vm351_vm9, %v319_v33 }
 0x13a   : > { %v375_v35 = vpop.f32.mrf.mxu0 }
 0x13b   : > { %v376_v36 = vadd.f32 %v375_v35, %v324_v34 }
 0x13d   : > { %378 = vst [vmem:[%s266_s7] sm:$0xff] %v376_v36 }
 0x13e PF: > { %s14_s19 = sadd.s32 1, %s586_s19   ;;  %s698_s15 = smov %s578_s17 }
 0x13f   : > { %p11_p9 = scmp.ge.s32.totalorder %s14_s19, 10   ;;  %s699_s16 = smov %s582_s18 }
 0x140   : > { %s700_s17 = smov %s703_s20  ;;  %s701_s18 = smov %s707_s21 }
 0x141   :  { %13 = sbr.rel (!%p11_p9) target bundleno = 3 (0x3), region = 76 }

</bundles_post_ra>
